<compile_context>
chip_gen: v7x
topology: tpu7x:2x2x1
jax: 0.10.0
libtpu: 0.0.40
codegen_flags: <defaults>
</compile_context>

<pallas_src>
import jax
import jax.numpy as jnp
from jax.experimental import pallas as pl
from jax.experimental.pallas import tpu as pltpu


def cat_axis2_kernel(x_ref, y_ref, o_ref):
    # x_ref: (tm, Lx), y_ref: (tm, Ly), o_ref: (tm, Lx + Ly)
    lx = x_ref.shape[1]
    o_ref[:, :lx] = x_ref[...]
    o_ref[:, lx:] = y_ref[...]


def cat2(x, y):
    """torch.cat((x, y), axis=2) for NCHW inputs with matching N, C, W."""
    N, C, Hx, W = x.shape
    Ny, Cy, Hy, Wy = y.shape
    assert (Ny, Cy, Wy) == (N, C, W), "cat along axis=2 needs matching N, C, W"
    assert x.dtype == y.dtype

    M = N * C
    Lx, Ly = Hx * W, Hy * W

    # Flatten each (n, c) spatial plane into one lane-dense row.  Concatenating
    # along H is exactly concatenating these rows along the last (lane) axis.
    xf = x.reshape(M, Lx)
    yf = y.reshape(M, Ly)

    # Row tiling: full array when small; 256-row tiles (sublane-aligned) when
    # M grows so BlockSpec auto-pipelining overlaps DMA with stores.
    tm = M if M <= 256 or (M % 256 != 0) else 256
    grid = (M // tm,)

    out_f = pl.pallas_call(
        cat_axis2_kernel,
        out_shape=jax.ShapeDtypeStruct((M, Lx + Ly), x.dtype),
        grid_spec=pl.GridSpec(
            grid=grid,
            in_specs=[
                pl.BlockSpec((tm, Lx), lambda i: (i, 0)),
                pl.BlockSpec((tm, Ly), lambda i: (i, 0)),
            ],
            out_specs=pl.BlockSpec((tm, Lx + Ly), lambda i: (i, 0)),
        ),
        compiler_params=pltpu.CompilerParams(
            dimension_semantics=("parallel",),
        ),
    )(xf, yf)

    # Metadata-only reshape back to NCHW with H = Hx + Hy.
    return out_f.reshape(N, C, Hx + Hy, W)


if __name__ == "__main__":
    key = jax.random.PRNGKey(0)
    kx, ky = jax.random.split(key, 2)

    # Small shapes consistent with the module: two NCHW tensors concatenated
    # along the H axis.
    N, C, H, W = 2, 4, 16, 16
    x = jax.random.normal(kx, (N, C, H, W), dtype=jnp.float32)
    y = jax.random.normal(ky, (N, C, H, W), dtype=jnp.float32)

    out = cat2(x, y)
    out = jax.block_until_ready(out)

    ref = jnp.concatenate((x, y), axis=2)
    assert out.shape == (N, C, 2 * H, W), out.shape
    assert jnp.array_equal(out, ref), float(jnp.abs(out - ref).max())
    print("KERNEL_OK")
</pallas_src>

<mosaic_0001>
module attributes {stable_mosaic.version = 11 : i64} {
  func.func @cat_axis2_kernel(%arg0: i32, %arg1: memref<8x256xf32, #tpu.memory_space<vmem>>, %arg2: memref<8x256xf32, #tpu.memory_space<vmem>>, %arg3: memref<8x512xf32, #tpu.memory_space<vmem>>) attributes {dimension_semantics = [#tpu.dimension_semantics<parallel>], iteration_bounds = array<i64: 1>, scalar_prefetch = 0 : i64, scratch_operands = 0 : i64, tpu.core_type = #tpu.core_type<tc>, window_params = [{transform_indices = @transform_0, window_bounds = array<i64: 8, 256>}, {transform_indices = @transform_1, window_bounds = array<i64: 8, 256>}, {transform_indices = @transform_2, window_bounds = array<i64: 8, 512>}]} {
    %c0 = arith.constant 0 : index
    %c0_0 = arith.constant 0 : index
    %0 = vector.load %arg1[%c0, %c0_0] : memref<8x256xf32, #tpu.memory_space<vmem>>, vector<8x256xf32>
    %c0_1 = arith.constant 0 : index
    %c0_2 = arith.constant 0 : index
    %1 = vector.load %arg3[%c0_1, %c0_2] : memref<8x512xf32, #tpu.memory_space<vmem>>, vector<8x256xf32>
    tpu.vector_store %arg3[%c0_1, %c0_2], %0 {strides = array<i32>} : memref<8x512xf32, #tpu.memory_space<vmem>>, vector<8x256xf32>,
    %c0_3 = arith.constant 0 : index
    %c0_4 = arith.constant 0 : index
    %2 = vector.load %arg2[%c0_3, %c0_4] : memref<8x256xf32, #tpu.memory_space<vmem>>, vector<8x256xf32>
    %c0_5 = arith.constant 0 : index
    %c256 = arith.constant 256 : index
    %3 = vector.load %arg3[%c0_5, %c256] : memref<8x512xf32, #tpu.memory_space<vmem>>, vector<8x256xf32>
    tpu.vector_store %arg3[%c0_5, %c256], %2 {strides = array<i32>} : memref<8x512xf32, #tpu.memory_space<vmem>>, vector<8x256xf32>,
    return
  }
  func.func @transform_0(%arg0: i32) -> (i32, i32) {
    %c0_i32 = arith.constant 0 : i32
    %c0_i32_0 = arith.constant 0 : i32
    return %arg0, %c0_i32 : i32, i32
  }
  func.func @transform_1(%arg0: i32) -> (i32, i32) {
    %c0_i32 = arith.constant 0 : i32
    %c0_i32_0 = arith.constant 0 : i32
    return %arg0, %c0_i32 : i32, i32
  }
  func.func @transform_2(%arg0: i32) -> (i32, i32) {
    %c0_i32 = arith.constant 0 : i32
    %c0_i32_0 = arith.constant 0 : i32
    return %arg0, %c0_i32 : i32, i32
  }
}

</mosaic_0001>

<bundles_post_ra>
// kernel: tpu_custom_call.1
= control target key start
LH: loop header
LB: loop body
LE: loop exit
PB: predicated region body
PF: predicated region fallthrough
CT: control target
= control target key end

     0   :  { %7 = vsyncpa [#allocation3], 0  ;;  %s189_s0 = inlined_call_operand.hbm [shape: f32[8,256], index: 0, kind: input, shape index: {}]   ;;  %s190_s1 = inlined_call_operand.hbm [shape: f32[8,256], index: 1, kind: input, shape index: {}]   ;;  %s191_s2 = inlined_call_operand.hbm [shape: f32[8,512], index: 2, kind: output, shape index: {}]  }
   0x1   :  { %8 = vsyncpa [#allocation6], 0 }
   0x2   :  { %9 = vsyncpa [#allocation4], 0  ;;  %s135_s9 = smov [#allocation2]   ;;  %s136_s11 = smov [#allocation5]  }
   0x3   :  { %s16_s10 = sshll.u32 %s135_s9, 4  ;;  %s26_s12 = sshll.u32 %s136_s11, 4  ;;  %s17_s10 = int_to_ptr.vmem [resolvable:$true] %s16_s10  ;;  %s27_s12 = int_to_ptr.vmem [resolvable:$true] %s26_s12 }
   0x4   :  { %s63_s15 = scalar_lea.hbm %s189_s0, 256 }
   0x5   :  { %p64_p0 = scmp.ne.s32.totalorder %s189_s0, %s63_s15  ;;  %p67_p1 = scmp.lt.u32.totalorder %s63_s15, %s189_s0 }
   0x7   :  { %p69_p2 = pnand %p67_p1, %p64_p0 }
   0x9   :  { %72 = shalt.err (!%p69_p2)
}
   0xa   :  { %s73_s20 = scalar_lea.vmem %s17_s10, 256  ;;  %p78_p4 = scmp.lt.s32.totalorder %s17_s10, %s17_s10 }
   0xb   :  { %p74_p3 = scmp.ne.s32.totalorder %s17_s10, %s73_s20  ;;  %p79_p5 = scmp.lt.s32.totalorder %s73_s20, %s73_s20 }
   0xd   :  { %p80_p6 = por %p79_p5, %p78_p4 }
   0xf   :  { %p81_p7 = pnand %p80_p6, %p74_p3 }
  0x11   :  { %84 = shalt.err (!%p81_p7)
}
  0x12   :  { %19 = dma.hbm_to_vmem [thread:$0]  %s189_s0, 256, %s17_s10, [#allocation3]  }
  0x13   :  { %s85_s25 = scalar_lea.hbm %s190_s1, 256 }
  0x14   :  { %p86_p8 = scmp.ne.s32.totalorder %s190_s1, %s85_s25  ;;  %p89_p9 = scmp.lt.u32.totalorder %s85_s25, %s190_s1 }
  0x16   :  { %p91_p10 = pnand %p89_p9, %p86_p8 }
  0x18   :  { %94 = shalt.err (!%p91_p10)
}
  0x19   :  { %s95_s30 = scalar_lea.vmem %s27_s12, 256  ;;  %p100_p12 = scmp.lt.s32.totalorder %s27_s12, %s27_s12 }
  0x1a   :  { %p96_p11 = scmp.ne.s32.totalorder %s27_s12, %s95_s30  ;;  %p101_p13 = scmp.lt.s32.totalorder %s95_s30, %s95_s30 }
  0x1c   :  { %p102_p0 = por %p101_p13, %p100_p12 }
  0x1e   :  { %p103_p1 = pnand %p102_p0, %p96_p11 }
  0x20   :  { %106 = shalt.err (!%p103_p1)
}
  0x21   :  { %29 = dma.hbm_to_vmem [thread:$0]  %s190_s1, 256, %s27_s12, [#allocation6]  }
  0x22   :  { %129 = dma.done.wait [#allocation3], 256  }
  0x23   :  { %130 = vsyncadd [#allocation3], 4294967040 }
  0x24   :  { %131 = dma.done.wait [#allocation6], 256  }
  0x25   :  { %132 = vsyncadd [#allocation6], 4294967040  ;;  %s137_s4 = smov [#allocation7]   ;;  %v36_v0 = vld [vmem:[#allocation2] sm:$0xff]  ;;  %v37_v1 = vld [vmem:[#allocation2 + $0x8] sm:$0xff] }
  0x26   :  { %s50_s5 = sshll.u32 %s137_s4, 4  ;;  %v40_v2 = vld [vmem:[#allocation5] sm:$0xff]  ;;  %38 = vst [vmem:[#allocation7] sm:$0xff] %v36_v0  ;;  %39 = vst [vmem:[#allocation7 + $0x8] sm:$0xff] %v37_v1  ;;  %v41_v3 = vld [vmem:[#allocation5 + $0x8] sm:$0xff]  ;;  %s51_s5 = int_to_ptr.vmem [resolvable:$true] %s50_s5 }
  0x27   :  { %42 = vst [vmem:[#allocation7 + $0x10] sm:$0xff] %v40_v2  ;;  %43 = vst [vmem:[#allocation7 + $0x18] sm:$0xff] %v41_v3  ;;  %s107_s6 = scalar_lea.vmem %s51_s5, 512  ;;  %p112_p3 = scmp.lt.s32.totalorder %s51_s5, %s51_s5 }
  0x28   :  { %p108_p2 = scmp.ne.s32.totalorder %s51_s5, %s107_s6  ;;  %p113_p4 = scmp.lt.s32.totalorder %s107_s6, %s107_s6 }
  0x2a   :  { %p114_p5 = por %p113_p4, %p112_p3 }
  0x2c   :  { %p115_p6 = pnand %p114_p5, %p108_p2 }
  0x2e   :  { %118 = shalt.err (!%p115_p6)
}
  0x2f   :  { %s119_s8 = scalar_lea.hbm %s191_s2, 512 }
  0x30   :  { %p120_p7 = scmp.ne.s32.totalorder %s191_s2, %s119_s8  ;;  %p123_p8 = scmp.lt.u32.totalorder %s119_s8, %s191_s2 }
  0x32   :  { %p125_p9 = pnand %p123_p8, %p120_p7 }
  0x34   :  { %128 = shalt.err (!%p125_p9)
}
  0x35   :  { %53 = dma.vmem_to_hbm [thread:$0]  %s51_s5, 512, %s191_s2, [#allocation4]  }
  0x36   :  { %133 = dma.done.wait [#allocation4], 512  }
  0x37   :  { %134 = vsyncadd [#allocation4], 4294966784 }
  0x38   :  { %57 = vsyncpa [#allocation3], 1 }
  0x39   :  { %58 = vsyncpa [#allocation6], 1 }
  0x3a   :  { %59 = vsyncpa [#allocation4], 1 }

</bundles_post_ra>
